<compile_context>
chip_gen: v7x
topology: tpu7x:2x2x1
jax: 0.10.0
libtpu: 0.0.40
codegen_flags: <defaults>
</compile_context>

<pallas_src>
import jax
import jax.numpy as jnp
from jax import lax
from jax.experimental import pallas as pl
from jax.experimental.pallas import tpu as pltpu

EPS = 1e-5


def _banded_weights_fused(w, W, cin_pad=None):
    """(Cout, Cin, 3, 3) conv weight -> (3*W*Cin, W*Cout) stacked banded matrix.

    B[dh*W*Cin + win*Cin + ci, wout*Cout + co] = w[co, ci, dh, win - wout + 1]
    (zero when |win - wout| > 1).  With activations laid out as rows=(n,h),
    lanes=(w,c), a 3x3 'SAME' conv becomes a single MXU matmul
        out = concat_dh(shift_rows(x, dh)) @ B
    with K = 3*W*Cin; horizontal zero padding is encoded in the band structure.
    """
    Cout, Cin = w.shape[0], w.shape[1]
    if cin_pad is not None and cin_pad > Cin:
        w = jnp.pad(w, ((0, 0), (0, cin_pad - Cin), (0, 0), (0, 0)))
        Cin = cin_pad
    taps = jnp.transpose(w, (2, 3, 1, 0)).astype(jnp.float32)   # (3, 3, Cin, Cout)
    win = jnp.arange(W)
    wout = jnp.arange(W)
    mats = []
    for dh in range(3):
        acc = jnp.zeros((W, Cin, W, Cout), jnp.float32)
        for dw in range(3):
            sel = (win[:, None] == wout[None, :] + (dw - 1)).astype(jnp.float32)
            acc = acc + sel[:, None, :, None] * taps[dh, dw][None, :, None, :]
        mats.append(acc.reshape(W * Cin, W * Cout))
    return jnp.concatenate(mats, axis=0)        # (3*W*Cin, W*Cout)


def _make_convblock_kernel(N, H, W, Cin_pad, Cout):
    NH = N * H
    WCout = W * Cout
    inv_m = 1.0 / float(N * H * W)

    def kernel(x_ref, b1_ref, b2_ref, fold_ref, spread_ref,
               g1_ref, be1_ref, g2_ref, be2_ref, o_ref):
        # Row-index mask (hoisted once): zero the per-image halo rows after roll.
        row_idx = lax.broadcasted_iota(jnp.int32, (NH, 1), 0)
        top_valid = (row_idx % H) != 0          # dh=0: row i reads row i-1
        bot_valid = (row_idx % H) != (H - 1)    # dh=2: row i reads row i+1

        def conv3x3(y, b_ref):
            """3x3 'SAME' conv (no bias) as ONE banded MXU matmul, f32 accum."""
            up = jnp.where(top_valid, pltpu.roll(y, 1, axis=0), 0.0)       # x[h-1]
            dn = jnp.where(bot_valid, pltpu.roll(y, NH - 1, axis=0), 0.0)  # x[h+1]
            lhs = jnp.concatenate([up, y, dn], axis=1).astype(jnp.bfloat16)
            return jnp.dot(lhs, b_ref[...], preferred_element_type=jnp.float32)

        def bn_relu(y, g_ref, be_ref):
            """Training-mode BN (biased var over N,H,W) fused into one FMA + ReLU."""
            s1 = jnp.sum(y, axis=0, keepdims=True)               # (1, WCout)
            s2 = jnp.sum(y * y, axis=0, keepdims=True)           # (1, WCout)
            s1c = jnp.dot(s1, fold_ref[...], preferred_element_type=jnp.float32)  # (1, Cout)
            s2c = jnp.dot(s2, fold_ref[...], preferred_element_type=jnp.float32)
            mean = s1c * inv_m
            var = s2c * inv_m - mean * mean                      # biased variance
            scale = g_ref[...] * lax.rsqrt(var + EPS)            # (1, Cout)
            shift = be_ref[...] - mean * scale
            scale_l = jnp.dot(scale, spread_ref[...], preferred_element_type=jnp.float32)
            shift_l = jnp.dot(shift, spread_ref[...], preferred_element_type=jnp.float32)
            return jnp.maximum(y * scale_l + shift_l, 0.0)

        # conv1 -> BN -> ReLU  (conv bias omitted: cancelled by train-mode BN)
        y1 = bn_relu(conv3x3(x_ref[...], b1_ref), g1_ref, be1_ref)
        # conv2 -> BN -> ReLU
        y2 = bn_relu(conv3x3(y1, b2_ref), g2_ref, be2_ref)
        o_ref[...] = y2

    return kernel


def conv_block_pallas(x_nchw, params):
    """x_nchw: (N, Cin, H, W) float32.  Returns (N, Cout, H, W) float32."""
    w1, b1, g1, be1, w2, b2, g2, be2 = params
    del b1, b2   # conv biases are exactly cancelled by training-mode BatchNorm
    N, Cin, H, W = x_nchw.shape
    Cout = w1.shape[0]
    NH = N * H
    Cin_pad = max(8, ((Cin + 7) // 8) * 8)     # pad channels so the slab is lane-dense
    WCout = W * Cout

    # rows = (n, h), lanes = (w, cin_pad)  -- pure wrapper-side layout plumbing
    x_nhwc = jnp.transpose(x_nchw, (0, 2, 3, 1)).astype(jnp.float32)
    if Cin_pad > Cin:
        x_nhwc = jnp.pad(x_nhwc, ((0, 0), (0, 0), (0, 0), (0, Cin_pad - Cin)))
    x_rows = x_nhwc.reshape(NH, W * Cin_pad)

    # Stacked banded weights: one K=3*W*C matmul per conv.
    b1m = _banded_weights_fused(w1, W, Cin_pad).astype(jnp.bfloat16)   # (3*W*Cin_pad, WCout)
    b2m = _banded_weights_fused(w2, W).astype(jnp.bfloat16)            # (3*W*Cout,    WCout)

    # Host-precomputed lane<->channel fold / spread matrices (0/1, kept f32 so the
    # tiny BN-stats dots stay full precision).
    fold = (jnp.arange(WCout)[:, None] % Cout ==
            jnp.arange(Cout)[None, :]).astype(jnp.float32)             # (WCout, Cout)
    spread = fold.T                                                    # (Cout, WCout)

    args = (x_rows, b1m, b2m, fold, spread,
            g1.reshape(1, -1).astype(jnp.float32), be1.reshape(1, -1).astype(jnp.float32),
            g2.reshape(1, -1).astype(jnp.float32), be2.reshape(1, -1).astype(jnp.float32))

    # Advisory cost estimate for the XLA scheduler.
    k1 = 3 * W * Cin_pad
    k2 = 3 * W * Cout
    flops = 2 * NH * k1 * WCout + 2 * NH * k2 * WCout + 10 * NH * WCout
    bytes_accessed = (4 * x_rows.size + 2 * (b1m.size + b2m.size)
                      + 4 * (fold.size + spread.size) + 4 * 4 * Cout
                      + 4 * NH * WCout)
    cost = pl.CostEstimate(flops=flops, transcendentals=2 * Cout,
                           bytes_accessed=bytes_accessed)

    vmem = pl.BlockSpec(memory_space=pltpu.MemorySpace.VMEM)
    out_rows = pl.pallas_call(
        _make_convblock_kernel(N, H, W, Cin_pad, Cout),
        out_shape=jax.ShapeDtypeStruct((NH, WCout), jnp.float32),
        in_specs=[vmem] * len(args),
        out_specs=vmem,
        cost_estimate=cost,
        compiler_params=pltpu.CompilerParams(vmem_limit_bytes=32 * 1024 * 1024),
    )(*args)

    # (N*H, W*Cout) -> (N, H, W, Cout) -> NCHW  (layout plumbing in the wrapper)
    return jnp.transpose(out_rows.reshape(N, H, W, Cout), (0, 3, 1, 2))


def conv_block_ref(x_nchw, params):
    """Pure-JAX reference with identical semantics (for validation)."""
    w1, b1, g1, be1, w2, b2, g2, be2 = params
    x = jnp.transpose(x_nchw, (0, 2, 3, 1))

    def conv(x, w, b):
        w_hwio = jnp.transpose(w, (2, 3, 1, 0))
        y = lax.conv_general_dilated(
            x, w_hwio, (1, 1), 'SAME',
            dimension_numbers=('NHWC', 'HWIO', 'NHWC'),
            precision=lax.Precision.HIGHEST)
        return y + b

    def bn_relu(y, g, b):
        mean = jnp.mean(y, axis=(0, 1, 2), keepdims=True)
        var = jnp.mean((y - mean) ** 2, axis=(0, 1, 2), keepdims=True)
        return jnp.maximum((y - mean) * lax.rsqrt(var + EPS) * g + b, 0.0)

    y = bn_relu(conv(x, w1, b1), g1, be1)
    y = bn_relu(conv(y, w2, b2), g2, be2)
    return jnp.transpose(y, (0, 3, 1, 2))


if __name__ == "__main__":
    N, Cin, Cout, H, W = 2, 4, 8, 16, 16

    key = jax.random.PRNGKey(0)
    ks = jax.random.split(key, 9)
    fan1 = Cin * 9
    fan2 = Cout * 9
    params = (
        jax.random.normal(ks[0], (Cout, Cin, 3, 3), jnp.float32) / jnp.sqrt(fan1),
        jax.random.normal(ks[1], (Cout,), jnp.float32) * 0.1,        # conv1 bias
        1.0 + 0.1 * jax.random.normal(ks[2], (Cout,), jnp.float32),  # bn1 gamma
        0.1 * jax.random.normal(ks[3], (Cout,), jnp.float32),        # bn1 beta
        jax.random.normal(ks[4], (Cout, Cout, 3, 3), jnp.float32) / jnp.sqrt(fan2),
        jax.random.normal(ks[5], (Cout,), jnp.float32) * 0.1,        # conv2 bias
        1.0 + 0.1 * jax.random.normal(ks[6], (Cout,), jnp.float32),  # bn2 gamma
        0.1 * jax.random.normal(ks[7], (Cout,), jnp.float32),        # bn2 beta
    )
    x = jax.random.normal(ks[8], (N, Cin, H, W), jnp.float32)

    out = jax.block_until_ready(conv_block_pallas(x, params))
    ref = jax.block_until_ready(conv_block_ref(x, params))

    assert out.shape == (N, Cout, H, W)
    max_diff = float(jnp.max(jnp.abs(out - ref)))
    assert jnp.allclose(out, ref, atol=5e-2, rtol=5e-2), \
        f"max abs diff = {max_diff}"

    print("KERNEL_OK")
</pallas_src>

<mosaic_0001>
module attributes {stable_mosaic.version = 11 : i64} {
  func.func @kernel(%arg0: memref<32x128xf32, #tpu.memory_space<vmem>>, %arg1: memref<384x128xbf16, #tpu.memory_space<vmem>>, %arg2: memref<384x128xbf16, #tpu.memory_space<vmem>>, %arg3: memref<128x8xf32, #tpu.memory_space<vmem>>, %arg4: memref<8x128xf32, #tpu.memory_space<vmem>>, %arg5: memref<1x8xf32, #tpu.memory_space<vmem>>, %arg6: memref<1x8xf32, #tpu.memory_space<vmem>>, %arg7: memref<1x8xf32, #tpu.memory_space<vmem>>, %arg8: memref<1x8xf32, #tpu.memory_space<vmem>>, %arg9: memref<32x128xf32, #tpu.memory_space<vmem>>) attributes {dimension_semantics = [], scalar_prefetch = 0 : i64, scratch_operands = 0 : i64, tpu.core_type = #tpu.core_type<tc>} {
    %0 = tpu.iota {dimensions = array<i32: 0>} : vector<32x1xi32>
    %c16_i32 = arith.constant 16 : i32
    %c0_i32 = arith.constant 0 : i32
    %1 = arith.cmpi eq, %c16_i32, %c0_i32 : i32
    %c1_i32 = arith.constant 1 : i32
    %2 = arith.select %1, %c1_i32, %c16_i32 : i32
    %3 = vector.broadcast %2 : i32 to vector<32x1xi32>
    %4 = arith.remsi %0, %3 : vector<32x1xi32>
    %c0_i32_0 = arith.constant 0 : i32
    %5 = vector.broadcast %c0_i32_0 : i32 to vector<32x1xi32>
    %6 = arith.cmpi ne, %4, %5 : vector<32x1xi32>
    %c0_i32_1 = arith.constant 0 : i32
    %7 = vector.broadcast %c0_i32_1 : i32 to vector<32x1xi32>
    %8 = arith.cmpi slt, %4, %7 : vector<32x1xi32>
    %c0_i32_2 = arith.constant 0 : i32
    %9 = arith.cmpi slt, %2, %c0_i32_2 : i32
    %10 = vector.broadcast %9 : i1 to vector<32x1xi1>
    %11 = vector.broadcast %10 : vector<32x1xi1> to vector<32x1xi1>
    %12 = arith.xori %8, %11 : vector<32x1xi1>
    %13 = arith.andi %12, %6 : vector<32x1xi1>
    %14 = vector.broadcast %2 : i32 to vector<32x1xi32>
    %15 = arith.addi %4, %14 : vector<32x1xi32>
    %16 = arith.select %13, %15, %4 : vector<32x1xi1>, vector<32x1xi32>
    %c0_i32_3 = arith.constant 0 : i32
    %17 = vector.broadcast %c0_i32_3 : i32 to vector<32x1xi32>
    %18 = arith.cmpi ne, %16, %17 : vector<32x1xi32>
    %c16_i32_4 = arith.constant 16 : i32
    %c0_i32_5 = arith.constant 0 : i32
    %19 = arith.cmpi eq, %c16_i32_4, %c0_i32_5 : i32
    %c1_i32_6 = arith.constant 1 : i32
    %20 = arith.select %19, %c1_i32_6, %c16_i32_4 : i32
    %21 = vector.broadcast %20 : i32 to vector<32x1xi32>
    %22 = arith.remsi %0, %21 : vector<32x1xi32>
    %c0_i32_7 = arith.constant 0 : i32
    %23 = vector.broadcast %c0_i32_7 : i32 to vector<32x1xi32>
    %24 = arith.cmpi ne, %22, %23 : vector<32x1xi32>
    %c0_i32_8 = arith.constant 0 : i32
    %25 = vector.broadcast %c0_i32_8 : i32 to vector<32x1xi32>
    %26 = arith.cmpi slt, %22, %25 : vector<32x1xi32>
    %c0_i32_9 = arith.constant 0 : i32
    %27 = arith.cmpi slt, %20, %c0_i32_9 : i32
    %28 = vector.broadcast %27 : i1 to vector<32x1xi1>
    %29 = vector.broadcast %28 : vector<32x1xi1> to vector<32x1xi1>
    %30 = arith.xori %26, %29 : vector<32x1xi1>
    %31 = arith.andi %30, %24 : vector<32x1xi1>
    %32 = vector.broadcast %20 : i32 to vector<32x1xi32>
    %33 = arith.addi %22, %32 : vector<32x1xi32>
    %34 = arith.select %31, %33, %22 : vector<32x1xi1>, vector<32x1xi32>
    %c15_i32 = arith.constant 15 : i32
    %35 = vector.broadcast %c15_i32 : i32 to vector<32x1xi32>
    %36 = arith.cmpi ne, %34, %35 : vector<32x1xi32>
    %c0 = arith.constant 0 : index
    %c0_10 = arith.constant 0 : index
    %37 = vector.load %arg0[%c0, %c0_10] : memref<32x128xf32, #tpu.memory_space<vmem>>, vector<32x128xf32>
    %c1_i32_11 = arith.constant 1 : i32
    %38 = tpu.dynamic_rotate %37 by %c1_i32_11 dim 0 : vector<32x128xf32>, i32 -> vector<32x128xf32>
    %cst = arith.constant 0.000000e+00 : f32
    %39 = vector.shape_cast %18 : vector<32x1xi1> to vector<32x1xi1>
    %40 = vector.broadcast %39 : vector<32x1xi1> to vector<32x128xi1>
    %41 = vector.broadcast %cst : f32 to vector<32x128xf32>
    %42 = arith.select %40, %38, %41 : vector<32x128xi1>, vector<32x128xf32>
    %c31_i32 = arith.constant 31 : i32
    %43 = tpu.dynamic_rotate %37 by %c31_i32 dim 0 : vector<32x128xf32>, i32 -> vector<32x128xf32>
    %cst_12 = arith.constant 0.000000e+00 : f32
    %44 = vector.shape_cast %36 : vector<32x1xi1> to vector<32x1xi1>
    %45 = vector.broadcast %44 : vector<32x1xi1> to vector<32x128xi1>
    %46 = vector.broadcast %cst_12 : f32 to vector<32x128xf32>
    %47 = arith.select %45, %43, %46 : vector<32x128xi1>, vector<32x128xf32>
    %48 = tpu.concatenate %42, %37, %47 in 1 : vector<32x128xf32>, vector<32x128xf32>, vector<32x128xf32> -> vector<32x384xf32>
    %49 = arith.truncf %48 : vector<32x384xf32> to vector<32x384xbf16>
    %c0_13 = arith.constant 0 : index
    %c0_14 = arith.constant 0 : index
    %50 = vector.load %arg1[%c0_13, %c0_14] : memref<384x128xbf16, #tpu.memory_space<vmem>>, vector<384x128xbf16>
    %cst_15 = arith.constant dense<0.000000e+00> : vector<32x128xf32>
    %51 = tpu.matmul %49, %50, %cst_15 {dimension_numbers = #tpu.dot_dimension_numbers<[1], [0], [0], [1], [0, 0, 1, 1], [], []>} : vector<32x384xbf16>, vector<384x128xbf16>, vector<32x128xf32> -> vector<32x128xf32>
    %cst_16 = arith.constant dense<0.000000e+00> : vector<128xf32>
    %52 = vector.multi_reduction <add>, %51, %cst_16 [0] : vector<32x128xf32> to vector<128xf32>
    %53 = vector.shape_cast %52 : vector<128xf32> to vector<1x128xf32>
    %54 = arith.mulf %51, %51 : vector<32x128xf32>
    %cst_17 = arith.constant dense<0.000000e+00> : vector<128xf32>
    %55 = vector.multi_reduction <add>, %54, %cst_17 [0] : vector<32x128xf32> to vector<128xf32>
    %56 = vector.shape_cast %55 : vector<128xf32> to vector<1x128xf32>
    %c0_18 = arith.constant 0 : index
    %c0_19 = arith.constant 0 : index
    %57 = vector.load %arg3[%c0_18, %c0_19] : memref<128x8xf32, #tpu.memory_space<vmem>>, vector<128x8xf32>
    %cst_20 = arith.constant dense<0.000000e+00> : vector<1x8xf32>
    %58 = tpu.matmul %53, %57, %cst_20 {dimension_numbers = #tpu.dot_dimension_numbers<[1], [0], [0], [1], [0, 0, 1, 1], [], []>} : vector<1x128xf32>, vector<128x8xf32>, vector<1x8xf32> -> vector<1x8xf32>
    %c0_21 = arith.constant 0 : index
    %c0_22 = arith.constant 0 : index
    %59 = vector.load %arg3[%c0_21, %c0_22] : memref<128x8xf32, #tpu.memory_space<vmem>>, vector<128x8xf32>
    %cst_23 = arith.constant dense<0.000000e+00> : vector<1x8xf32>
    %60 = tpu.matmul %56, %59, %cst_23 {dimension_numbers = #tpu.dot_dimension_numbers<[1], [0], [0], [1], [0, 0, 1, 1], [], []>} : vector<1x128xf32>, vector<128x8xf32>, vector<1x8xf32> -> vector<1x8xf32>
    %cst_24 = arith.constant 0.001953125 : f32
    %61 = vector.broadcast %cst_24 : f32 to vector<1x8xf32>
    %62 = arith.mulf %58, %61 : vector<1x8xf32>
    %cst_25 = arith.constant 0.001953125 : f32
    %63 = vector.broadcast %cst_25 : f32 to vector<1x8xf32>
    %64 = arith.mulf %60, %63 : vector<1x8xf32>
    %65 = arith.mulf %62, %62 : vector<1x8xf32>
    %66 = arith.subf %64, %65 : vector<1x8xf32>
    %c0_26 = arith.constant 0 : index
    %c0_27 = arith.constant 0 : index
    %67 = vector.load %arg5[%c0_26, %c0_27] : memref<1x8xf32, #tpu.memory_space<vmem>>, vector<1x8xf32>
    %cst_28 = arith.constant 9.99999974E-6 : f32
    %68 = vector.broadcast %cst_28 : f32 to vector<1x8xf32>
    %69 = arith.addf %66, %68 : vector<1x8xf32>
    %70 = math.rsqrt %69 : vector<1x8xf32>
    %71 = arith.mulf %67, %70 : vector<1x8xf32>
    %c0_29 = arith.constant 0 : index
    %c0_30 = arith.constant 0 : index
    %72 = vector.load %arg6[%c0_29, %c0_30] : memref<1x8xf32, #tpu.memory_space<vmem>>, vector<1x8xf32>
    %73 = arith.mulf %62, %71 : vector<1x8xf32>
    %74 = arith.subf %72, %73 : vector<1x8xf32>
    %c0_31 = arith.constant 0 : index
    %c0_32 = arith.constant 0 : index
    %75 = vector.load %arg4[%c0_31, %c0_32] : memref<8x128xf32, #tpu.memory_space<vmem>>, vector<8x128xf32>
    %cst_33 = arith.constant dense<0.000000e+00> : vector<1x128xf32>
    %76 = tpu.matmul %71, %75, %cst_33 {dimension_numbers = #tpu.dot_dimension_numbers<[1], [0], [0], [1], [0, 0, 1, 1], [], []>} : vector<1x8xf32>, vector<8x128xf32>, vector<1x128xf32> -> vector<1x128xf32>
    %c0_34 = arith.constant 0 : index
    %c0_35 = arith.constant 0 : index
    %77 = vector.load %arg4[%c0_34, %c0_35] : memref<8x128xf32, #tpu.memory_space<vmem>>, vector<8x128xf32>
    %cst_36 = arith.constant dense<0.000000e+00> : vector<1x128xf32>
    %78 = tpu.matmul %74, %77, %cst_36 {dimension_numbers = #tpu.dot_dimension_numbers<[1], [0], [0], [1], [0, 0, 1, 1], [], []>} : vector<1x8xf32>, vector<8x128xf32>, vector<1x128xf32> -> vector<1x128xf32>
    %79 = vector.broadcast %76 : vector<1x128xf32> to vector<32x128xf32>
    %80 = arith.mulf %51, %79 : vector<32x128xf32>
    %81 = vector.broadcast %78 : vector<1x128xf32> to vector<32x128xf32>
    %82 = arith.addf %80, %81 : vector<32x128xf32>
    %cst_37 = arith.constant 0.000000e+00 : f32
    %83 = vector.broadcast %cst_37 : f32 to vector<32x128xf32>
    %84 = arith.maximumf %82, %83 : vector<32x128xf32>
    %c1_i32_38 = arith.constant 1 : i32
    %85 = tpu.dynamic_rotate %84 by %c1_i32_38 dim 0 : vector<32x128xf32>, i32 -> vector<32x128xf32>
    %cst_39 = arith.constant 0.000000e+00 : f32
    %86 = vector.shape_cast %18 : vector<32x1xi1> to vector<32x1xi1>
    %87 = vector.broadcast %86 : vector<32x1xi1> to vector<32x128xi1>
    %88 = vector.broadcast %cst_39 : f32 to vector<32x128xf32>
    %89 = arith.select %87, %85, %88 : vector<32x128xi1>, vector<32x128xf32>
    %c31_i32_40 = arith.constant 31 : i32
    %90 = tpu.dynamic_rotate %84 by %c31_i32_40 dim 0 : vector<32x128xf32>, i32 -> vector<32x128xf32>
    %cst_41 = arith.constant 0.000000e+00 : f32
    %91 = vector.shape_cast %36 : vector<32x1xi1> to vector<32x1xi1>
    %92 = vector.broadcast %91 : vector<32x1xi1> to vector<32x128xi1>
    %93 = vector.broadcast %cst_41 : f32 to vector<32x128xf32>
    %94 = arith.select %92, %90, %93 : vector<32x128xi1>, vector<32x128xf32>
    %95 = tpu.concatenate %89, %84, %94 in 1 : vector<32x128xf32>, vector<32x128xf32>, vector<32x128xf32> -> vector<32x384xf32>
    %96 = arith.truncf %95 : vector<32x384xf32> to vector<32x384xbf16>
    %c0_42 = arith.constant 0 : index
    %c0_43 = arith.constant 0 : index
    %97 = vector.load %arg2[%c0_42, %c0_43] : memref<384x128xbf16, #tpu.memory_space<vmem>>, vector<384x128xbf16>
    %cst_44 = arith.constant dense<0.000000e+00> : vector<32x128xf32>
    %98 = tpu.matmul %96, %97, %cst_44 {dimension_numbers = #tpu.dot_dimension_numbers<[1], [0], [0], [1], [0, 0, 1, 1], [], []>} : vector<32x384xbf16>, vector<384x128xbf16>, vector<32x128xf32> -> vector<32x128xf32>
    %cst_45 = arith.constant dense<0.000000e+00> : vector<128xf32>
    %99 = vector.multi_reduction <add>, %98, %cst_45 [0] : vector<32x128xf32> to vector<128xf32>
    %100 = vector.shape_cast %99 : vector<128xf32> to vector<1x128xf32>
    %101 = arith.mulf %98, %98 : vector<32x128xf32>
    %cst_46 = arith.constant dense<0.000000e+00> : vector<128xf32>
    %102 = vector.multi_reduction <add>, %101, %cst_46 [0] : vector<32x128xf32> to vector<128xf32>
    %103 = vector.shape_cast %102 : vector<128xf32> to vector<1x128xf32>
    %c0_47 = arith.constant 0 : index
    %c0_48 = arith.constant 0 : index
    %104 = vector.load %arg3[%c0_47, %c0_48] : memref<128x8xf32, #tpu.memory_space<vmem>>, vector<128x8xf32>
    %cst_49 = arith.constant dense<0.000000e+00> : vector<1x8xf32>
    %105 = tpu.matmul %100, %104, %cst_49 {dimension_numbers = #tpu.dot_dimension_numbers<[1], [0], [0], [1], [0, 0, 1, 1], [], []>} : vector<1x128xf32>, vector<128x8xf32>, vector<1x8xf32> -> vector<1x8xf32>
    %c0_50 = arith.constant 0 : index
    %c0_51 = arith.constant 0 : index
    %106 = vector.load %arg3[%c0_50, %c0_51] : memref<128x8xf32, #tpu.memory_space<vmem>>, vector<128x8xf32>
    %cst_52 = arith.constant dense<0.000000e+00> : vector<1x8xf32>
    %107 = tpu.matmul %103, %106, %cst_52 {dimension_numbers = #tpu.dot_dimension_numbers<[1], [0], [0], [1], [0, 0, 1, 1], [], []>} : vector<1x128xf32>, vector<128x8xf32>, vector<1x8xf32> -> vector<1x8xf32>
    %cst_53 = arith.constant 0.001953125 : f32
    %108 = vector.broadcast %cst_53 : f32 to vector<1x8xf32>
    %109 = arith.mulf %105, %108 : vector<1x8xf32>
    %cst_54 = arith.constant 0.001953125 : f32
    %110 = vector.broadcast %cst_54 : f32 to vector<1x8xf32>
    %111 = arith.mulf %107, %110 : vector<1x8xf32>
    %112 = arith.mulf %109, %109 : vector<1x8xf32>
    %113 = arith.subf %111, %112 : vector<1x8xf32>
    %c0_55 = arith.constant 0 : index
    %c0_56 = arith.constant 0 : index
    %114 = vector.load %arg7[%c0_55, %c0_56] : memref<1x8xf32, #tpu.memory_space<vmem>>, vector<1x8xf32>
    %cst_57 = arith.constant 9.99999974E-6 : f32
    %115 = vector.broadcast %cst_57 : f32 to vector<1x8xf32>
    %116 = arith.addf %113, %115 : vector<1x8xf32>
    %117 = math.rsqrt %116 : vector<1x8xf32>
    %118 = arith.mulf %114, %117 : vector<1x8xf32>
    %c0_58 = arith.constant 0 : index
    %c0_59 = arith.constant 0 : index
    %119 = vector.load %arg8[%c0_58, %c0_59] : memref<1x8xf32, #tpu.memory_space<vmem>>, vector<1x8xf32>
    %120 = arith.mulf %109, %118 : vector<1x8xf32>
    %121 = arith.subf %119, %120 : vector<1x8xf32>
    %c0_60 = arith.constant 0 : index
    %c0_61 = arith.constant 0 : index
    %122 = vector.load %arg4[%c0_60, %c0_61] : memref<8x128xf32, #tpu.memory_space<vmem>>, vector<8x128xf32>
    %cst_62 = arith.constant dense<0.000000e+00> : vector<1x128xf32>
    %123 = tpu.matmul %118, %122, %cst_62 {dimension_numbers = #tpu.dot_dimension_numbers<[1], [0], [0], [1], [0, 0, 1, 1], [], []>} : vector<1x8xf32>, vector<8x128xf32>, vector<1x128xf32> -> vector<1x128xf32>
    %c0_63 = arith.constant 0 : index
    %c0_64 = arith.constant 0 : index
    %124 = vector.load %arg4[%c0_63, %c0_64] : memref<8x128xf32, #tpu.memory_space<vmem>>, vector<8x128xf32>
    %cst_65 = arith.constant dense<0.000000e+00> : vector<1x128xf32>
    %125 = tpu.matmul %121, %124, %cst_65 {dimension_numbers = #tpu.dot_dimension_numbers<[1], [0], [0], [1], [0, 0, 1, 1], [], []>} : vector<1x8xf32>, vector<8x128xf32>, vector<1x128xf32> -> vector<1x128xf32>
    %126 = vector.broadcast %123 : vector<1x128xf32> to vector<32x128xf32>
    %127 = arith.mulf %98, %126 : vector<32x128xf32>
    %128 = vector.broadcast %125 : vector<1x128xf32> to vector<32x128xf32>
    %129 = arith.addf %127, %128 : vector<32x128xf32>
    %cst_66 = arith.constant 0.000000e+00 : f32
    %130 = vector.broadcast %cst_66 : f32 to vector<32x128xf32>
    %131 = arith.maximumf %129, %130 : vector<32x128xf32>
    %c0_67 = arith.constant 0 : index
    %c0_68 = arith.constant 0 : index
    %132 = vector.load %arg9[%c0_67, %c0_68] : memref<32x128xf32, #tpu.memory_space<vmem>>, vector<32x128xf32>
    tpu.vector_store %arg9[%c0_67, %c0_68], %131 {strides = array<i32>} : memref<32x128xf32, #tpu.memory_space<vmem>>, vector<32x128xf32>,
    return
  }
}

</mosaic_0001>

<bundles_post_ra>
// kernel: tpu_custom_call.1
= control target key start
LH: loop header
LB: loop body
LE: loop exit
PB: predicated region body
PF: predicated region fallthrough
CT: control target
= control target key end

     0   :  { %14 = vsyncpa [#allocation3], 0  ;;  %s2569_s0 = inlined_call_operand.vmem [shape: f32[32,128], index: 0, kind: input, shape index: {}]   ;;  %s2570_s1 = inlined_call_operand.hbm [shape: bf16[384,128], index: 1, kind: input, shape index: {}]   ;;  %s2571_s2 = inlined_call_operand.hbm [shape: bf16[384,128], index: 2, kind: input, shape index: {}]   ;;  %s2572_s3 = inlined_call_operand.vmem [shape: f32[128,8], index: 3, kind: input, shape index: {}]   ;;  %s2573_s4 = inlined_call_operand.vmem [shape: f32[8,128], index: 4, kind: input, shape index: {}]   ;;  %s2574_s5 = inlined_call_operand.vmem [shape: f32[1,8], index: 5, kind: input, shape index: {}]   ;;  %s2575_s6 = inlined_call_operand.vmem [shape: f32[1,8], index: 6, kind: input, shape index: {}]   ;;  %s2576_s7 = inlined_call_operand.vmem [shape: f32[1,8], index: 7, kind: input, shape index: {}]   ;;  %s2577_s8 = inlined_call_operand.vmem [shape: f32[1,8], index: 8, kind: input, shape index: {}]   ;;  %s2578_s9 = inlined_call_operand.hbm [shape: f32[32,128], index: 9, kind: output, shape index: {}]  }
   0x1   :  { %15 = vsyncpa [#allocation6], 0 }
   0x2   :  { %16 = vsyncpa [#allocation4], 0  ;;  %s2162_s30 = smov [#allocation2]   ;;  %s2090_s13 = scalar_lea.hbm %s2570_s1, 3072 }
   0x3   :  { %s24_s10 = sshll.u32 %s2162_s30, 4  ;;  %p2091_p0 = scmp.ne.s32.totalorder %s2570_s1, %s2090_s13  ;;  %s25_s10 = int_to_ptr.vmem [resolvable:$true] %s24_s10 }
   0x4   :  { %p2094_p1 = scmp.lt.u32.totalorder %s2090_s13, %s2570_s1 }
   0x6   :  { %p2096_p2 = pnand %p2094_p1, %p2091_p0 }
   0x8   :  { %2099 = shalt.err (!%p2096_p2)
}
   0x9   :  { %s2100_s18 = scalar_lea.vmem %s25_s10, 3072  ;;  %p2105_p4 = scmp.lt.s32.totalorder %s25_s10, %s25_s10 }
   0xa   :  { %p2101_p3 = scmp.ne.s32.totalorder %s25_s10, %s2100_s18  ;;  %p2106_p5 = scmp.lt.s32.totalorder %s2100_s18, %s2100_s18 }
   0xc   :  { %p2107_p6 = por %p2106_p5, %p2105_p4 }
   0xe   :  { %p2108_p7 = pnand %p2107_p6, %p2101_p3 }
  0x10   :  { %2111 = shalt.err (!%p2108_p7)
}
  0x11   :  { %s2163_s19 = smov 64   ;;  %s2164_s20 = smov 4  }
  0x12   :  { %30 = dma.hbm_to_vmem [thread:$0]  %s2570_s1, 3072, %s25_s10, [#allocation3], %s2163_s19, %s2163_s19, %s2164_s20  }
  0x13   :  { %s2165_s23 = smov [#allocation5]   ;;  %s2112_s27 = scalar_lea.hbm %s2571_s2, 3072 }
  0x14   :  { %s36_s24 = sshll.u32 %s2165_s23, 4  ;;  %p2113_p8 = scmp.ne.s32.totalorder %s2571_s2, %s2112_s27  ;;  %s37_s24 = int_to_ptr.vmem [resolvable:$true] %s36_s24 }
  0x15   :  { %p2116_p9 = scmp.lt.u32.totalorder %s2112_s27, %s2571_s2 }
  0x17   :  { %p2118_p10 = pnand %p2116_p9, %p2113_p8 }
  0x19   :  { %2121 = shalt.err (!%p2118_p10)
}
  0x1a   :  { %s2122_s12 = scalar_lea.vmem %s37_s24, 3072  ;;  %p2127_p12 = scmp.lt.s32.totalorder %s37_s24, %s37_s24 }
  0x1b   :  { %p2123_p11 = scmp.ne.s32.totalorder %s37_s24, %s2122_s12  ;;  %p2128_p13 = scmp.lt.s32.totalorder %s2122_s12, %s2122_s12 }
  0x1d   :  { %p2129_p0 = por %p2128_p13, %p2127_p12 }
  0x1f   :  { %p2130_p1 = pnand %p2129_p0, %p2123_p11 }
  0x21   :  { %2133 = shalt.err (!%p2130_p1)
}
  0x22   :  { %42 = dma.hbm_to_vmem [thread:$0]  %s2571_s2, 3072, %s37_s24, [#allocation6], %s2163_s19, %s2163_s19, %s2164_s20  }
  0x23   :  { %2156 = dma.done.wait [#allocation3], 3072  }
  0x24   :  { %2157 = vsyncadd [#allocation3], 4294964224 }
  0x25   :  { %2158 = dma.done.wait [#allocation6], 3072  }
  0x26   :  { %2159 = vsyncadd [#allocation6], 4294964224  ;;  %v2038_v0 = vld [vmem:[#allocation2 + $0x40] sm:$0xff]   ;;  %v2041_v3 = vld [vmem:[#allocation2 + $0x48] sm:$0xff]   ;;  %v62_v8 = vlaneseq  ;;  %vm2166_vm5 = vmmov 1   ;;  %vm2168_vm11 = vmmov 0  }
  0x27   :  { %v2039_v1 = vld [vmem:[#allocation2] sm:$0xff]   ;;  %1579 = vmatprep.subr.bf16.mxu0 %v2038_v0  ;;  %v2042_v4 = vld [vmem:[#allocation2 + $0x8] sm:$0xff]   ;;  %v2044_v6 = vld [vmem:[#allocation2 + $0x50] sm:$0xff]   ;;  %vm655_vm12 = vcmask 64512  }
  0x28   :  { %v2040_v2 = vld [vmem:[#allocation2 + $0x80] sm:$0xff]   ;;  %1580 = vmatpush3.bf16.msra.mxu0 %v2039_v1  ;;  %v2043_v5 = vld [vmem:[#allocation2 + $0x88] sm:$0xff]   ;;  %v2045_v7 = vld [vmem:[#allocation2 + $0x10] sm:$0xff]   ;;  %v2247_v13 = vshrl.u32 %v62_v8, 7 }
  0x29   :  { %1731 = vmatprep.subr.bf16.mxu1 %v2040_v2  ;;  %1581 = vmatprep.subr.bf16.mxu0 %v2041_v3  ;;  %v2046_v9 = vld [vmem:[#allocation2 + $0x90] sm:$0xff]   ;;  %v2047_v10 = vld [vmem:[#allocation2 + $0x58] sm:$0xff]   ;;  %v2050_v14 = vld [vmem:[#allocation2 + $0x60] sm:$0xff]  }
  0x2a   :  { %1732 = vmatpush3.bf16.msra.mxu1 %v2040_v2  ;;  %v2048_v11 = vld [vmem:[#allocation2 + $0x18] sm:$0xff]   ;;  %v2052_v15 = vld [vmem:[#allocation2 + $0xa0] sm:$0xff]   ;;  %v64_v17 = vadd.s32 8, %v2247_v13  ;;  %v2053_v18 = vld [vmem:[#allocation2 + $0x68] sm:$0xff]   ;;  %v66_v19 = vadd.s32 24, %v2247_v13  ;;  %v71_v20 = vand.u32 15, %v2247_v13 }
  0x2b   :  { %1733 = vmatprep.subr.bf16.mxu1 %v2043_v5  ;;  %v2049_v12 = vld [vmem:[#allocation2 + $0x98] sm:$0xff]   ;;  %v2051_v16 = vld [vmem:[#allocation2 + $0x20] sm:$0xff]   ;;  %v2055_v21 = vld [vmem:[#allocation2 + $0xa8] sm:$0xff]   ;;  %v65_v22 = vadd.s32 16, %v2247_v13  ;;  %vm131_vm0 = vcmp.lt.s32.totalorder %v2247_v13, 1  ;;  %vm152_vm3 = vcmp.lt.s32.totalorder %v2247_v13, 7 }
  0x2c   :  { %1582 = vmatpush3.bf16.msra.mxu0 %v2042_v4  ;;  %v2054_v23 = vld [vmem:[#allocation2 + $0x28] sm:$0xff]   ;;  %v78_v24 = vand.u32 15, %v64_v17  ;;  %v2056_v25 = vld [vmem:[#allocation2 + $0x70] sm:$0xff]   ;;  %v92_v26 = vand.u32 15, %v66_v19  ;;  %vm2254_vm1 = vcmp.ne.s32.totalorder %v71_v20, 0  ;;  %v2059_v30 = vld [vmem:[#allocation2 + $0x78] sm:$0xff]  }
  0x2d   :  { %1583 = vmatprep.subr.bf16.mxu0 %v2044_v6  ;;  %v2057_v27 = vld [vmem:[#allocation2 + $0x30] sm:$0xff]   ;;  %v123_v32 = vld [vmem:[%s2569_s0] sm:$0xff]  ;;  %v124_v33 = vld [vmem:[%s2569_s0 + $0x8] sm:$0xff]  ;;  %v85_v36 = vand.u32 15, %v65_v22  ;;  %v2167_v2 = vmov 0.0|0.0  }
  0x2e   :  { %1734 = vmatpush3.bf16.msra.mxu1 %v2043_v5  ;;  %v2058_v28 = vld [vmem:[#allocation2 + $0xb0] sm:$0xff]   ;;  %vm2258_vm2 = vcmp.ne.s32.totalorder %v78_v24, 15  ;;  %v126_v34 = vld [vmem:[%s2569_s0 + $0x18] sm:$0xff]  ;;  %vm2272_vm4 = vcmp.ne.s32.totalorder %v92_v26, 15  ;;  %v127_v39 = vrot.slane %v123_v32, 7  ;;  %v128_v40 = vrot.slane %v124_v33, 7  ;;  %vm2279_vm6 = vmpackc.low %vm2166_vm5, %vm2254_vm1 }
  0x2f   :  { %1735 = vmatprep.subr.bf16.mxu1 %v2046_v9  ;;  %v2060_v37 = vld [vmem:[#allocation2 + $0x38] sm:$0xff]   ;;  %v148_v41 = vrot.slane %v123_v32, 1  ;;  %v149_v42 = vrot.slane %v124_v33, 1  ;;  %v125_v44 = vld [vmem:[%s2569_s0 + $0x10] sm:$0xff]  ;;  %v170_v45 = vpack.c.bf16 %v124_v33, %v123_v32  ;;  %v130_v46 = vrot.slane %v126_v34, 7  ;;  %vm2289_vm7 = vmpackc.low %vm2258_vm2, %vm2166_vm5 }
  0x30   :  { %1584 = vmatpush3.bf16.msra.mxu0 %v2045_v7  ;;  %v2061_v38 = vld [vmem:[#allocation2 + $0xb8] sm:$0xff]   ;;  %v150_v47 = vrot.slane %v125_v44, 1  ;;  %v487_v49 = vld [vmem:[%s2572_s3] sm:$0xff]  ;;  %v134_v50 = vsel %vm131_vm0, %v127_v39, %v128_v40  ;;  %v151_v52 = vrot.slane %v126_v34, 1  ;;  %v488_v53 = vld [vmem:[%s2572_s3 + $0x8] sm:$0xff]  ;;  %v129_v55 = vrot.slane %v125_v44, 7 }
  0x31   :  { %1585 = vmatprep.subr.bf16.mxu0 %v2047_v10  ;;  %v155_v51 = vsel %vm152_vm3, %v148_v41, %v149_v42  ;;  %399 = vmatprep.mubr.bf16.mxu0 %v170_v45  ;;  %v135_v54 = vsel %vm131_vm0, %v130_v46, %v127_v39  ;;  %vm2310_vm8 = vmpackc.low %vm2272_vm4, %vm2166_vm5  ;;  %vm117_vm9 = vcmp.ne.s32.totalorder %v85_v36, 0  ;;  %v173_v62 = vpack.c.bf16 %v126_v34, %v125_v44  ;;  %v489_v6 = vld [vmem:[%s2572_s3 + $0x10] sm:$0xff]  ;;  %v490_v7 = vld [vmem:[%s2572_s3 + $0x18] sm:$0xff] }
  0x32   :  { %1736 = vmatpush3.bf16.msra.mxu1 %v2046_v9  ;;  %v154_v56 = vsel %vm152_vm3, %v149_v42, %v150_v47  ;;  %v153_v59 = vsel %vm152_vm3, %v150_v47, %v151_v52  ;;  %v156_v60 = vsel %vm152_vm3, %v151_v52, %v148_v41  ;;  %v1528_v61 = vpack.c.bf16 %v134_v50, %v135_v54  ;;  %vm2321_vm10 = vmpackc.low %vm2166_vm5, %vm117_vm9  ;;  %v491_v9 = vld [vmem:[%s2572_s3 + $0x20] sm:$0xff]  ;;  %v492_v10 = vld [vmem:[%s2572_s3 + $0x28] sm:$0xff] }
  0x33   :  { %1737 = vmatprep.subr.bf16.mxu1 %v2049_v12  ;;  %v1534_v58 = vpack.c.bf16 %v154_v56, %v155_v51  ;;  %v2325_v0 = vpack.c.bf16 %v488_v53, %v487_v49  ;;  %v1537_v1 = vpack.c.bf16 %v156_v60, %v153_v59  ;;  %v132_v3 = vsel %vm131_vm0, %v129_v55, %v130_v46  ;;  %v496_v17 = vld [vmem:[%s2572_s3 + $0x48] sm:$0xff]  ;;  %v497_v19 = vld [vmem:[%s2572_s3 + $0x50] sm:$0xff]  ;;  %v498_v20 = vld [vmem:[%s2572_s3 + $0x58] sm:$0xff] }
  0x34   :  { %1586 = vmatpush3.bf16.msra.mxu0 %v2048_v11  ;;  %v133_v4 = vsel %vm131_vm0, %v128_v40, %v129_v55  ;;  %v2349_v8 = vpack.c.bf16 %v490_v7, %v489_v6  ;;  %v2361_v11 = vpack.c.bf16 %v492_v10, %v491_v9  ;;  %v499_v22 = vld [vmem:[%s2572_s3 + $0x60] sm:$0xff]  ;;  %v502_v26 = vld [vmem:[%s2572_s3 + $0x78] sm:$0xff] }
  0x35   :  { %1587 = vmatprep.subr.bf16.mxu0 %v2050_v14  ;;  %1747 = vmatprep.mubr.msk.bf16.mxu1 %vm2289_vm7, %v1534_v58  ;;  %v1531_v5 = vpack.c.bf16 %v132_v3, %v133_v4  ;;  %v494_v14 = vld [vmem:[%s2572_s3 + $0x38] sm:$0xff] }
  0x36   :  { %1738 = vmatpush3.bf16.msra.mxu1 %v2049_v12  ;;  %v493_v12 = vld [vmem:[%s2572_s3 + $0x30] sm:$0xff] }
  0x37   :  { %1739 = vmatprep.subr.bf16.mxu1 %v2052_v15 }
  0x38   :  { %1588 = vmatpush3.bf16.msra.mxu0 %v2051_v16  ;;  %v495_v16 = vld [vmem:[%s2572_s3 + $0x40] sm:$0xff] }
  0x39   :  { %1589 = vmatprep.subr.bf16.mxu0 %v2053_v18  ;;  %v2385_v18 = vpack.c.bf16 %v496_v17, %v495_v16  ;;  %v2458_v17 = vld [vmem:[%s2573_s4] sm:$0xff] }
  0x3a   :  { %1740 = vmatpush3.bf16.msra.mxu1 %v2052_v15  ;;  %v2373_v15 = vpack.c.bf16 %v494_v14, %v493_v12 }
  0x3b   :  { %1741 = vmatprep.subr.bf16.mxu1 %v2055_v21 }
  0x3c   :  { %1590 = vmatpush3.bf16.msra.mxu0 %v2054_v23  ;;  %v500_v23 = vld [vmem:[%s2572_s3 + $0x68] sm:$0xff] }
  0x3d   :  { %1591 = vmatprep.subr.bf16.mxu0 %v2056_v25  ;;  %v2409_v24 = vpack.c.bf16 %v500_v23, %v499_v22  ;;  %v501_v25 = vld [vmem:[%s2572_s3 + $0x70] sm:$0xff] }
  0x3e   :  { %1742 = vmatpush3.bf16.msra.mxu1 %v2055_v21  ;;  %v2397_v21 = vpack.c.bf16 %v498_v20, %v497_v19  ;;  %v2062_v19 = vld [vmem:[#allocation5 + $0x40] sm:$0xff]  }
  0x3f   :  { %1743 = vmatprep.subr.bf16.mxu1 %v2058_v28  ;;  %v2064_v20 = vld [vmem:[#allocation5 + $0x80] sm:$0xff]  }
  0x40   :  { %1592 = vmatpush3.bf16.msra.mxu0 %v2057_v27  ;;  %v2421_v27 = vpack.c.bf16 %v502_v26, %v501_v25 }
  0x41   :  { %1593 = vmatprep.subr.bf16.mxu0 %v2059_v30 }
  0x42   :  { %1744 = vmatpush3.bf16.msra.mxu1 %v2058_v28  ;;  %v2169_v28 = vmov 0.0  }
  0x43   :  { %1745 = vmatprep.subr.bf16.mxu1 %v2061_v38 }
  0x44   :  { %1594 = vmatpush3.bf16.msra.mxu0 %v2060_v37 }
  0x45   :  { %1931 = vmatprep.subr.bf16.mxu0 %v2167_v2 }
  0x46   :  { %1746 = vmatpush3.bf16.msra.mxu1 %v2061_v38 }
  0x47   :  { %1529 = vmatmul.mubr.msk.bf16.vlgmr.msra.gmra.mrb[0].mxu0 %vm2279_vm6, %v1528_v61  ;;  %1955 = vmatprep.subr.bf16.mxu1 %v2167_v2 }
  0x48   :  { %407 = vmatprep.mubr.bf16.mxu0 %v173_v62  ;;  %1933 = vmatpush3.bf16.msra.mxu0 %v2325_v0 }
  0x49   :  { %1748 = vmatmul.mubr.msk.bf16.vlgmr.msra.gmra.mrb[0].mxu1 %vm2310_vm8, %v1537_v1  ;;  %1934 = vmatprep.subr.bf16.mxu0 %v2167_v2 }
  0x4a   :  { %1957 = vmatpush3.bf16.msra.mxu1 %v2325_v0  ;;  %1818 = vmatprep.mubr.msk.f32.mxu1 %vm2168_vm11, %v2169_v28 }
  0x4b   :  { %1958 = vmatprep.subr.bf16.mxu1 %v2167_v2 }
  0x4c   :  { %1936 = vmatpush3.bf16.msra.mxu0 %v2349_v8 }
  0x4d   :  { %1937 = vmatprep.subr.bf16.mxu0 %v2167_v2 }
  0x4e   :  { %1960 = vmatpush3.bf16.msra.mxu1 %v2349_v8 }
  0x4f   :  { %1532 = vmatmul.mubr.msk.bf16.gmra.mrb[4].mxu0 %vm2321_vm10, %v1531_v5  ;;  %1961 = vmatprep.subr.bf16.mxu1 %v2167_v2 }
  0x50   :  { %1939 = vmatpush3.bf16.msra.mxu0 %v2361_v11  ;;  %1783 = vmatprep.mubr.msk.f32.mxu0 %vm2168_vm11, %v2169_v28 }
  0x51   :  { %1940 = vmatprep.subr.bf16.mxu0 %v2167_v2 }
  0x52   :  { %1963 = vmatpush3.bf16.msra.mxu1 %v2361_v11 }
  0x53   :  { %1964 = vmatprep.subr.bf16.mxu1 %v2167_v2 }
  0x54   :  { %1942 = vmatpush3.bf16.msra.mxu0 %v2373_v15 }
  0x55   :  { %1943 = vmatprep.subr.bf16.mxu0 %v2167_v2 }
  0x56   :  { %1966 = vmatpush3.bf16.msra.mxu1 %v2373_v15 }
  0x57   :  { %1967 = vmatprep.subr.bf16.mxu1 %v2167_v2 }
  0x58   :  { %1945 = vmatpush3.bf16.msra.mxu0 %v2385_v18 }
  0x59   :  { %1946 = vmatprep.subr.bf16.mxu0 %v2167_v2 }
  0x5a   :  { %1969 = vmatpush3.bf16.msra.mxu1 %v2385_v18 }
  0x5b   :  { %1970 = vmatprep.subr.bf16.mxu1 %v2167_v2 }
  0x5c   :  { %1948 = vmatpush3.bf16.msra.mxu0 %v2397_v21 }
  0x5d   :  { %1949 = vmatprep.subr.bf16.mxu0 %v2167_v2 }
  0x5e   :  { %1972 = vmatpush3.bf16.msra.mxu1 %v2397_v21 }
  0x5f   :  { %1973 = vmatprep.subr.bf16.mxu1 %v2167_v2 }
  0x60   :  { %1951 = vmatpush3.bf16.msra.mxu0 %v2409_v24 }
  0x61   :  { %1952 = vmatprep.subr.bf16.mxu0 %v2167_v2 }
  0x62   :  { %1975 = vmatpush3.bf16.msra.mxu1 %v2409_v24 }
  0x63   :  { %1976 = vmatprep.subr.bf16.mxu1 %v2167_v2 }
  0x64   :  { %1954 = vmatpush3.bf16.msra.mxu0 %v2421_v27 }
  0x65   :  { %1821 = vmatprep.subr.mxu0 %v2169_v28 }
  0x66   :  { %1978 = vmatpush3.bf16.msra.mxu1 %v2421_v27 }
  0x67   :  { %1826 = vmatprep.subr.mxu1 %v2169_v28 }
 0x11a   :  { %v1595_v29 = vpop.f32.mrb[0].mxu0 }
 0x11b   :  { %v1596_v30 = vpop.f32.mrb[1].mxu0 }
 0x11c   :  { %v1597_v31 = vadd.f32 %v1596_v30, %v1595_v29  ;;  %v1598_v32 = vpop.f32.mrb[2].mxu0  ;;  %v1749_v33 = vpop.f32.mrb[0].mxu1 }
 0x11d   :  { %v1599_v34 = vpop.f32.mrb[3].mxu0  ;;  %v450_v35 = vpop.f32.mrb[1].mxu1 }
 0x11e   :  { %v1600_v36 = vadd.f32 %v1599_v34, %v1598_v32  ;;  %v2431_v37 = vadd.f32 %v1597_v31, %v450_v35  ;;  %v1750_v38 = vpop.f32.mrb[2].mxu1  ;;  %v647_v34 = vld [vmem:[%s2574_s5] sm:$0x1] }
 0x11f   :  { %v453_v39 = vpop.f32.mrb[3].mxu1 }
 0x120   :  { %v2433_v40 = vadd.f32 %v1600_v36, %v453_v39  ;;  %v474_v49 = vmul.f32 %v2431_v37, %v2431_v37  ;;  %v2063_v36 = vld [vmem:[#allocation5] sm:$0xff]   ;;  %v2065_v39 = vld [vmem:[#allocation5 + $0x48] sm:$0xff]  }
 0x122   :  { %v1601_v41 = vpop.f32.mrb[4].mxu0  ;;  %v475_v44 = vmul.f32 %v2433_v40, %v2433_v40  ;;  %v465_v50 = vadd.f32 %v2433_v40, %v2431_v37 }
 0x123   :  { %v1602_v42 = vpop.f32.mrb[5].mxu0 }
 0x124   :  { %v1603_v45 = vadd.f32 %v1602_v42, %v1601_v41  ;;  %v1604_v46 = vpop.f32.mrb[6].mxu0  ;;  %v478_v53 = vadd.f32 %v475_v44, %v474_v49  ;;  %v651_v41 = vld [vmem:[%s2575_s6] sm:$0x1]  ;;  %v2066_v44 = vld [vmem:[#allocation5 + $0x8] sm:$0xff]   ;;  %v2069_v49 = vld [vmem:[#allocation5 + $0x10] sm:$0xff]  }
 0x125   :  { %v1605_v47 = vpop.f32.mrb[7].mxu0 }
 0x126   :  { %v2441_v51 = vadd.f32 %v1749_v33, %v1603_v45  ;;  %v1606_v52 = vadd.f32 %v1605_v47, %v1604_v46  ;;  %v2067_v46 = vld [vmem:[#allocation5 + $0x88] sm:$0xff]   ;;  %v2068_v47 = vld [vmem:[#allocation5 + $0x50] sm:$0xff]  }
 0x128   :  { %v466_v54 = vadd.f32 %v465_v50, %v2441_v51  ;;  %v476_v55 = vmul.f32 %v2441_v51, %v2441_v51  ;;  %v2446_v56 = vadd.f32 %v1750_v38, %v1606_v52  ;;  %v2070_v50 = vld [vmem:[#allocation5 + $0x90] sm:$0xff]   ;;  %v2071_v52 = vld [vmem:[#allocation5 + $0x58] sm:$0xff]  }
 0x12a   :  { %v479_v58 = vadd.f32 %v478_v53, %v476_v55  ;;  %v467_v59 = vadd.f32 %v466_v54, %v2446_v56  ;;  %v477_v60 = vmul.f32 %v2446_v56, %v2446_v56  ;;  %v2072_v53 = vld [vmem:[#allocation5 + $0x18] sm:$0xff]   ;;  %v2074_v55 = vld [vmem:[#allocation5 + $0x60] sm:$0xff]  }
 0x12b   :  { %v2073_v54 = vld [vmem:[#allocation5 + $0x98] sm:$0xff]  }
 0x12c   :  { %v468_v61 = vrot.slane %v467_v59, 4  ;;  %v480_v62 = vadd.f32 %v479_v58, %v477_v60  ;;  %v2075_v58 = vld [vmem:[#allocation5 + $0x20] sm:$0xff]   ;;  %v2077_v60 = vld [vmem:[#allocation5 + $0x68] sm:$0xff]  }
 0x12e   :  { %v469_v1 = vadd.f32 %v468_v61, %v467_v59  ;;  %v481_v3 = vrot.slane %v480_v62, 4  ;;  %v2076_v59 = vld [vmem:[#allocation5 + $0xa0] sm:$0xff]   ;;  %v2078_v61 = vld [vmem:[#allocation5 + $0x28] sm:$0xff]  }
 0x130   :  { %v470_v4 = vrot.slane %v469_v1, 2  ;;  %v482_v5 = vadd.f32 %v481_v3, %v480_v62  ;;  %v2079_v62 = vld [vmem:[#allocation5 + $0xa8] sm:$0xff]   ;;  %v2081_v3 = vld [vmem:[#allocation5 + $0x30] sm:$0xff]  }
 0x132   :  { %v471_v6 = vadd.f32 %v470_v4, %v469_v1  ;;  %v483_v7 = vrot.slane %v482_v5, 2  ;;  %v2080_v1 = vld [vmem:[#allocation5 + $0x70] sm:$0xff]  }
 0x133   :  { %v2082_v4 = vld [vmem:[#allocation5 + $0xb0] sm:$0xff]  }
 0x134   :  { %v472_v9 = vrot.slane %v471_v6, 1  ;;  %v484_v10 = vadd.f32 %v483_v7, %v482_v5  ;;  %v2083_v5 = vld [vmem:[#allocation5 + $0x78] sm:$0xff]  }
 0x135   :  { %v2085_v7 = vld [vmem:[#allocation5 + $0xb8] sm:$0xff]  }
 0x136   :  { %v473_v12 = vadd.f32 %v472_v9, %v471_v6  ;;  %v485_v14 = vrot.slane %v484_v10, 1  ;;  %v2084_v6 = vld [vmem:[#allocation5 + $0x38] sm:$0xff]   ;;  %v2473_v9 = vsub.s32 0, %v2247_v13 }
 0x138   :  { %1784 = vmatmul.mubr.f32.vlgmr.msra.gmra.mrb[8].mxu0 %v473_v12  ;;  %v486_v16 = vadd.f32 %v485_v14, %v484_v10 }
 0x139   :  { %1823 = vmatprep.mubr.msk.f32.mxu0 %vm2168_vm11, %v2169_v28  ;;  %1822 = vmatpush3.msra.mxu0 %v2458_v17 }
 0x13a   :  { %1819 = vmatmul.mubr.f32.vlgmr.msra.gmra.mrb[4].mxu1 %v486_v16  ;;  %1655 = vmatprep.subr.bf16.mxu0 %v2062_v19 }
 0x13b   :  { %1828 = vmatprep.mubr.msk.f32.mxu1 %vm2168_vm11, %v2169_v28  ;;  %1827 = vmatpush3.msra.mxu1 %v2458_v17 }
 0x13c   :  { %1831 = vmatprep.subr.bf16.mxu1 %v2064_v20 }
 0x20b   :  { %v569_v22 = vpop.f32.mrb[8].mxu0 }
 0x20c   :  { %v643_v23 = vmul.f32 0.001953125, %v569_v22  ;;  %v1785_v25 = vpop.f32.mrb[9].mxu0 }
 0x20d   :  { %v639_v26 = vpop.f32.mrb[4].mxu1 }
 0x20e   :  { %v645_v29 = vmul.f32 %v643_v23, %v643_v23  ;;  %v644_v30 = vmul.f32 0.001953125, %v639_v26  ;;  %v1820_v31 = vpop.f32.mrb[5].mxu1 }
 0x210   :  { %v646_v32 = vsub.f32 %v644_v30, %v645_v29 }
 0x212   :  { %v648_v33 = vadd.f32 1e-05, %v646_v32 }
 0x214   :  { %2086 = vrsqrt.f32 %v648_v33 }
 0x21e   :  { %v2087_v35 = vpop.eup %2086 }
 0x21f   :  { %v650_v38 = vmul.f32 %v2087_v35, %v647_v34 }
 0x221   :  { %1824 = vmatmul.mubr.msk.f32.vlgmr.msra.gmra.mrb[10].mxu0 %vm655_vm12, %v650_v38  ;;  %v652_v42 = vmul.f32 %v650_v38, %v643_v23 }
 0x222   :  { %1656 = vmatpush3.bf16.msra.mxu0 %v2063_v36 }
 0x223   :  { %v653_v45 = vsub.f32 %v651_v41, %v652_v42  ;;  %1657 = vmatprep.subr.bf16.mxu0 %v2065_v39 }
 0x225   :  { %1829 = vmatmul.mubr.msk.f32.vlgmr.msra.gmra.mrb[6].mxu1 %vm655_vm12, %v653_v45 }
 0x226   :  { %1832 = vmatpush3.bf16.msra.mxu1 %v2064_v20  ;;  %1658 = vmatpush3.bf16.msra.mxu0 %v2066_v44 }
 0x227   :  { %1833 = vmatprep.subr.bf16.mxu1 %v2067_v46  ;;  %1659 = vmatprep.subr.bf16.mxu0 %v2068_v47 }
 0x22a   :  { %1834 = vmatpush3.bf16.msra.mxu1 %v2067_v46  ;;  %1660 = vmatpush3.bf16.msra.mxu0 %v2069_v49 }
 0x22b   :  { %1835 = vmatprep.subr.bf16.mxu1 %v2070_v50  ;;  %1661 = vmatprep.subr.bf16.mxu0 %v2071_v52 }
 0x22e   :  { %1836 = vmatpush3.bf16.msra.mxu1 %v2070_v50  ;;  %1662 = vmatpush3.bf16.msra.mxu0 %v2072_v53 }
 0x22f   :  { %1837 = vmatprep.subr.bf16.mxu1 %v2073_v54  ;;  %1663 = vmatprep.subr.bf16.mxu0 %v2074_v55 }
 0x232   :  { %1838 = vmatpush3.bf16.msra.mxu1 %v2073_v54  ;;  %1664 = vmatpush3.bf16.msra.mxu0 %v2075_v58 }
 0x233   :  { %1839 = vmatprep.subr.bf16.mxu1 %v2076_v59  ;;  %1665 = vmatprep.subr.bf16.mxu0 %v2077_v60 }
 0x236   :  { %1840 = vmatpush3.bf16.msra.mxu1 %v2076_v59  ;;  %1666 = vmatpush3.bf16.msra.mxu0 %v2078_v61 }
 0x237   :  { %1841 = vmatprep.subr.bf16.mxu1 %v2079_v62  ;;  %1667 = vmatprep.subr.bf16.mxu0 %v2080_v1 }
 0x23a   :  { %1842 = vmatpush3.bf16.msra.mxu1 %v2079_v62  ;;  %1668 = vmatpush3.bf16.msra.mxu0 %v2081_v3 }
 0x23b   :  { %1843 = vmatprep.subr.bf16.mxu1 %v2082_v4  ;;  %1669 = vmatprep.subr.bf16.mxu0 %v2083_v5 }
 0x23e   :  { %1844 = vmatpush3.bf16.msra.mxu1 %v2082_v4  ;;  %1670 = vmatpush3.bf16.msra.mxu0 %v2084_v6 }
 0x23f   :  { %1845 = vmatprep.subr.bf16.mxu1 %v2085_v7  ;;  %1979 = vmatprep.subr.bf16.mxu0 %v2167_v2 }
 0x242   :  { %1846 = vmatpush3.bf16.msra.mxu1 %v2085_v7 }
 0x243   :  { %2003 = vmatprep.subr.bf16.mxu1 %v2167_v2 }
 0x2f4   :  { %v725_v10 = vpop.f32.mrb[10].mxu0 }
 0x2f5   :  { %v805_v12 = vrot.slane %v725_v10, %v2473_v9  ;;  %v1825_v14 = vpop.f32.mrb[11].mxu0 }
 0x2f7   :  { %v806_v16 = vmul.f32 %v805_v12, %v2431_v37  ;;  %v807_v20 = vmul.f32 %v805_v12, %v2433_v40  ;;  %v808_v22 = vmul.f32 %v805_v12, %v2441_v51  ;;  %v809_v23 = vmul.f32 %v805_v12, %v2446_v56 }
 0x2f8   :  { %v798_v19 = vpop.f32.mrb[6].mxu1 }
 0x2f9   :  { %v813_v25 = vrot.slane %v798_v19, %v2473_v9  ;;  %v1830_v26 = vpop.f32.mrb[7].mxu1 }
 0x2fb   :  { %v814_v29 = vadd.f32 %v813_v25, %v806_v16  ;;  %v815_v30 = vadd.f32 %v813_v25, %v807_v20  ;;  %v816_v31 = vadd.f32 %v813_v25, %v808_v22  ;;  %v817_v32 = vadd.f32 %v813_v25, %v809_v23 }
 0x2fd   :  { %v820_v33 = vmax.f32 %v816_v31, 0.0  ;;  %v821_v34 = vmax.f32 %v817_v32, 0.0  ;;  %v818_v35 = vmax.f32 %v814_v29, 0.0  ;;  %v819_v36 = vmax.f32 %v815_v30, 0.0 }
 0x2ff   :  { %v825_v38 = vrot.slane %v821_v34, 7  ;;  %v837_v37 = vrot.slane %v821_v34, 1  ;;  %v822_v39 = vrot.slane %v818_v35, 7  ;;  %v823_v41 = vrot.slane %v819_v36, 7 }
 0x300   :  { %v847_v40 = vpack.c.bf16 %v819_v36, %v818_v35  ;;  %v834_v42 = vrot.slane %v818_v35, 1  ;;  %v835_v51 = vrot.slane %v819_v36, 1  ;;  %v836_v44 = vrot.slane %v820_v33, 1 }
 0x301   :  { %v828_v56 = vsel %vm131_vm0, %v822_v39, %v823_v41  ;;  %v829_v45 = vsel %vm131_vm0, %v825_v38, %v822_v39  ;;  %v850_v46 = vpack.c.bf16 %v821_v34, %v820_v33  ;;  %v824_v47 = vrot.slane %v820_v33, 7 }
 0x302   :  { %1076 = vmatprep.mubr.bf16.mxu0 %v847_v40  ;;  %v1566_v49 = vpack.c.bf16 %v828_v56, %v829_v45  ;;  %v839_v50 = vsel %vm152_vm3, %v835_v51, %v836_v44  ;;  %v840_v52 = vsel %vm152_vm3, %v834_v42, %v835_v51  ;;  %v838_v53 = vsel %vm152_vm3, %v836_v44, %v837_v37 }
 0x303   :  { %v1572_v54 = vpack.c.bf16 %v839_v50, %v840_v52  ;;  %v841_v55 = vsel %vm152_vm3, %v837_v37, %v834_v42  ;;  %v826_v58 = vsel %vm131_vm0, %v824_v47, %v825_v38  ;;  %v827_v59 = vsel %vm131_vm0, %v823_v41, %v824_v47 }
 0x304   :  { %1567 = vmatmul.mubr.msk.bf16.vlgmr.msra.gmra.mrb[12].mxu0 %vm2279_vm6, %v1566_v49  ;;  %v1575_v60 = vpack.c.bf16 %v841_v55, %v838_v53  ;;  %v1569_v61 = vpack.c.bf16 %v826_v58, %v827_v59  ;;  %v1308_v49 = vld [vmem:[%s2576_s7] sm:$0x1]  ;;  %s2170_s7 = smov [#allocation7]  }
 0x305   :  { %1847 = vmatprep.mubr.msk.bf16.mxu1 %vm2289_vm7, %v1572_v54  ;;  %1084 = vmatprep.mubr.bf16.mxu0 %v850_v46 }
 0x306   :  { %1848 = vmatmul.mubr.msk.bf16.vlgmr.msra.gmra.mrb[8].mxu1 %vm2310_vm8, %v1575_v60  ;;  %1981 = vmatpush3.bf16.msra.mxu0 %v2325_v0 }
 0x307   :  { %2005 = vmatpush3.bf16.msra.mxu1 %v2325_v0  ;;  %1982 = vmatprep.subr.bf16.mxu0 %v2167_v2 }
 0x308   :  { %2006 = vmatprep.subr.bf16.mxu1 %v2167_v2  ;;  %1918 = vmatprep.mubr.msk.f32.mxu1 %vm2168_vm11, %v2169_v28 }
 0x30a   :  { %1984 = vmatpush3.bf16.msra.mxu0 %v2349_v8 }
 0x30b   :  { %2008 = vmatpush3.bf16.msra.mxu1 %v2349_v8  ;;  %1985 = vmatprep.subr.bf16.mxu0 %v2167_v2 }
 0x30c   :  { %1570 = vmatmul.mubr.msk.bf16.gmra.mrb[16].mxu0 %vm2321_vm10, %v1569_v61  ;;  %2009 = vmatprep.subr.bf16.mxu1 %v2167_v2 }
 0x30d   :  { %1883 = vmatprep.mubr.msk.f32.mxu0 %vm2168_vm11, %v2169_v28 }
 0x30e   :  { %1987 = vmatpush3.bf16.msra.mxu0 %v2361_v11 }
 0x30f   :  { %2011 = vmatpush3.bf16.msra.mxu1 %v2361_v11  ;;  %1988 = vmatprep.subr.bf16.mxu0 %v2167_v2 }
 0x310   :  { %2012 = vmatprep.subr.bf16.mxu1 %v2167_v2 }
 0x312   :  { %1990 = vmatpush3.bf16.msra.mxu0 %v2373_v15 }
 0x313   :  { %2014 = vmatpush3.bf16.msra.mxu1 %v2373_v15  ;;  %1991 = vmatprep.subr.bf16.mxu0 %v2167_v2 }
 0x314   :  { %2015 = vmatprep.subr.bf16.mxu1 %v2167_v2 }
 0x316   :  { %1993 = vmatpush3.bf16.msra.mxu0 %v2385_v18 }
 0x317   :  { %2017 = vmatpush3.bf16.msra.mxu1 %v2385_v18  ;;  %1994 = vmatprep.subr.bf16.mxu0 %v2167_v2 }
 0x318   :  { %2018 = vmatprep.subr.bf16.mxu1 %v2167_v2 }
 0x31a   :  { %1996 = vmatpush3.bf16.msra.mxu0 %v2397_v21 }
 0x31b   :  { %2020 = vmatpush3.bf16.msra.mxu1 %v2397_v21  ;;  %1997 = vmatprep.subr.bf16.mxu0 %v2167_v2 }
 0x31c   :  { %2021 = vmatprep.subr.bf16.mxu1 %v2167_v2 }
 0x31e   :  { %1999 = vmatpush3.bf16.msra.mxu0 %v2409_v24 }
 0x31f   :  { %2023 = vmatpush3.bf16.msra.mxu1 %v2409_v24  ;;  %2000 = vmatprep.subr.bf16.mxu0 %v2167_v2 }
 0x320   :  { %2024 = vmatprep.subr.bf16.mxu1 %v2167_v2 }
 0x322   :  { %2002 = vmatpush3.bf16.msra.mxu0 %v2421_v27 }
 0x323   :  { %2026 = vmatpush3.bf16.msra.mxu1 %v2421_v27  ;;  %1921 = vmatprep.subr.mxu0 %v2169_v28 }
 0x324   :  { %1926 = vmatprep.subr.mxu1 %v2169_v28 }
 0x3d7   :  { %v1671_v13 = vpop.f32.mrb[12].mxu0 }
 0x3d8   :  { %v1672_v43 = vpop.f32.mrb[13].mxu0 }
 0x3d9   :  { %v1673_v48 = vadd.f32 %v1672_v43, %v1671_v13  ;;  %v1849_v57 = vpop.f32.mrb[8].mxu1  ;;  %v1674_v63 = vpop.f32.mrb[14].mxu0 }
 0x3da   :  { %v1127_v0 = vpop.f32.mrb[9].mxu1  ;;  %v1675_v8 = vpop.f32.mrb[15].mxu0 }
 0x3db   :  { %v1128_v11 = vadd.f32 %v1673_v48, %v1127_v0  ;;  %v1676_v15 = vadd.f32 %v1675_v8, %v1674_v63  ;;  %v1850_v18 = vpop.f32.mrb[10].mxu1 }
 0x3dc   :  { %v1130_v21 = vpop.f32.mrb[11].mxu1 }
 0x3dd   :  { %v1131_v2 = vadd.f32 %v1676_v15, %v1130_v21  ;;  %v1151_v5 = vmul.f32 %v1128_v11, %v1128_v11 }
 0x3df   :  { %v1677_v24 = vpop.f32.mrb[16].mxu0  ;;  %v1152_v1 = vmul.f32 %v1131_v2, %v1131_v2  ;;  %v1142_v6 = vadd.f32 %v1131_v2, %v1128_v11 }
 0x3e0   :  { %v1678_v62 = vpop.f32.mrb[17].mxu0 }
 0x3e1   :  { %v1679_v27 = vadd.f32 %v1678_v62, %v1677_v24  ;;  %v1680_v3 = vpop.f32.mrb[18].mxu0  ;;  %v1155_v12 = vadd.f32 %v1152_v1, %v1151_v5 }
 0x3e2   :  { %v1681_v4 = vpop.f32.mrb[19].mxu0 }
 0x3e3   :  { %v1136_v7 = vadd.f32 %v1849_v57, %v1679_v27  ;;  %v1682_v10 = vadd.f32 %v1681_v4, %v1680_v3 }
 0x3e5   :  { %v1143_v14 = vadd.f32 %v1142_v6, %v1136_v7  ;;  %v1153_v16 = vmul.f32 %v1136_v7, %v1136_v7  ;;  %v1139_v19 = vadd.f32 %v1850_v18, %v1682_v10 }
 0x3e7   :  { %v1156_v20 = vadd.f32 %v1155_v12, %v1153_v16  ;;  %v1144_v22 = vadd.f32 %v1143_v14, %v1139_v19  ;;  %v1154_v23 = vmul.f32 %v1139_v19, %v1139_v19 }
 0x3e9   :  { %v1145_v25 = vrot.slane %v1144_v22, 4  ;;  %v1157_v26 = vadd.f32 %v1156_v20, %v1154_v23 }
 0x3eb   :  { %v1146_v29 = vadd.f32 %v1145_v25, %v1144_v22  ;;  %v1158_v30 = vrot.slane %v1157_v26, 4 }
 0x3ed   :  { %v1147_v31 = vrot.slane %v1146_v29, 2  ;;  %v1159_v32 = vadd.f32 %v1158_v30, %v1157_v26 }
 0x3ef   :  { %v1148_v33 = vadd.f32 %v1147_v31, %v1146_v29  ;;  %v1160_v34 = vrot.slane %v1159_v32, 2 }
 0x3f1   :  { %v1149_v35 = vrot.slane %v1148_v33, 1  ;;  %v1161_v36 = vadd.f32 %v1160_v34, %v1159_v32 }
 0x3f3   :  { %v1150_v38 = vadd.f32 %v1149_v35, %v1148_v33  ;;  %v1162_v37 = vrot.slane %v1161_v36, 1 }
 0x3f5   :  { %1884 = vmatmul.mubr.f32.vlgmr.msra.gmra.mrb[20].mxu0 %v1150_v38  ;;  %v1163_v39 = vadd.f32 %v1162_v37, %v1161_v36 }
 0x3f6   :  { %1922 = vmatpush3.msra.mxu0 %v2458_v17  ;;  %1923 = vmatprep.mubr.msk.f32.mxu0 %vm2168_vm11, %v2169_v28 }
 0x3f7   :  { %1919 = vmatmul.mubr.f32.vlgmr.msra.gmra.mrb[12].mxu1 %v1163_v39 }
 0x3f8   :  { %1927 = vmatpush3.msra.mxu1 %v2458_v17  ;;  %1928 = vmatprep.mubr.msk.f32.mxu1 %vm2168_vm11, %v2169_v28  ;;  %v1312_v28 = vld [vmem:[%s2577_s8] sm:$0x1]  ;;  %s1490_s8 = sshll.u32 %s2170_s7, 4  ;;  %s1491_s8 = int_to_ptr.vmem [resolvable:$true] %s1490_s8 }
 0x3f9   :  { %s2134_s1 = scalar_lea.vmem %s1491_s8, 512  ;;  %p2139_p3 = scmp.lt.s32.totalorder %s1491_s8, %s1491_s8 }
 0x3fa   :  { %p2135_p2 = scmp.ne.s32.totalorder %s1491_s8, %s2134_s1  ;;  %p2140_p4 = scmp.lt.s32.totalorder %s2134_s1, %s2134_s1 }
 0x3fc   :  { %p2141_p5 = por %p2140_p4, %p2139_p3 }
 0x3fe   :  { %p2142_p6 = pnand %p2141_p5, %p2135_p2 }
 0x4c8   :  { %v1230_v41 = vpop.f32.mrb[20].mxu0 }
 0x4c9   :  { %v1304_v40 = vmul.f32 0.001953125, %v1230_v41  ;;  %v1885_v42 = vpop.f32.mrb[21].mxu0 }
 0x4ca   :  { %v1300_v51 = vpop.f32.mrb[12].mxu1 }
 0x4cb   :  { %v1306_v44 = vmul.f32 %v1304_v40, %v1304_v40  ;;  %v1305_v56 = vmul.f32 0.001953125, %v1300_v51  ;;  %v1920_v45 = vpop.f32.mrb[13].mxu1 }
 0x4cd   :  { %v1307_v46 = vsub.f32 %v1305_v56, %v1306_v44 }
 0x4cf   :  { %v1309_v47 = vadd.f32 1e-05, %v1307_v46 }
 0x4d1   :  { %2088 = vrsqrt.f32 %v1309_v47 }
 0x4db   :  { %v2089_v50 = vpop.eup %2088 }
 0x4dc   :  { %v1311_v52 = vmul.f32 %v2089_v50, %v1308_v49 }
 0x4de   :  { %1924 = vmatmul.mubr.msk.f32.vlgmr.msra.gmra.mrb[22].mxu0 %vm655_vm12, %v1311_v52  ;;  %v1313_v17 = vmul.f32 %v1311_v52, %v1304_v40 }
 0x4e0   :  { %v1314_v53 = vsub.f32 %v1312_v28, %v1313_v17 }
 0x4e2   :  { %1929 = vmatmul.mubr.msk.f32.vlgmr.msra.gmra.mrb[14].mxu1 %vm655_vm12, %v1314_v53 }
 0x5b1   :  { %v1384_v54 = vpop.f32.mrb[22].mxu0 }
 0x5b2   :  { %v1464_v55 = vrot.slane %v1384_v54, %v2473_v9  ;;  %v1925_v58 = vpop.f32.mrb[23].mxu0 }
 0x5b4   :  { %v1465_v59 = vmul.f32 %v1464_v55, %v1128_v11  ;;  %v1466_v61 = vmul.f32 %v1464_v55, %v1131_v2  ;;  %v1467_v13 = vmul.f32 %v1464_v55, %v1136_v7  ;;  %v1468_v43 = vmul.f32 %v1464_v55, %v1139_v19 }
 0x5b5   :  { %v1457_v60 = vpop.f32.mrb[14].mxu1 }
 0x5b6   :  { %v1472_v48 = vrot.slane %v1457_v60, %v2473_v9  ;;  %v1930_v57 = vpop.f32.mrb[15].mxu1 }
 0x5b8   :  { %v1473_v63 = vadd.f32 %v1472_v48, %v1465_v59  ;;  %v1474_v0 = vadd.f32 %v1472_v48, %v1466_v61  ;;  %v1475_v8 = vadd.f32 %v1472_v48, %v1467_v13  ;;  %v1476_v15 = vadd.f32 %v1472_v48, %v1468_v43 }
 0x5ba   :  { %v1477_v18 = vmax.f32 %v1473_v63, 0.0  ;;  %v1478_v21 = vmax.f32 %v1474_v0, 0.0  ;;  %v1479_v24 = vmax.f32 %v1475_v8, 0.0  ;;  %v1480_v62 = vmax.f32 %v1476_v15, 0.0 }
 0x5bc   :  { %1481 = vst [vmem:[#allocation7] sm:$0xff] %v1477_v18  ;;  %1482 = vst [vmem:[#allocation7 + $0x8] sm:$0xff] %v1478_v21 }
 0x5bd   :  { %1483 = vst [vmem:[#allocation7 + $0x10] sm:$0xff] %v1479_v24  ;;  %1484 = vst [vmem:[#allocation7 + $0x18] sm:$0xff] %v1480_v62 }
 0x5be   :  { %2145 = shalt.err (!%p2142_p6)
}
 0x5bf   :  { %s2146_s13 = scalar_lea.hbm %s2578_s9, 512 }
 0x5c0   :  { %p2147_p7 = scmp.ne.s32.totalorder %s2578_s9, %s2146_s13  ;;  %p2150_p8 = scmp.lt.u32.totalorder %s2146_s13, %s2578_s9 }
 0x5c2   :  { %p2152_p9 = pnand %p2150_p8, %p2147_p7 }
 0x5c4   :  { %2155 = shalt.err (!%p2152_p9)
}
 0x5c5   :  { %s2171_s18 = smov 128   ;;  %s2172_s19 = smov 8  }
 0x5c6   :  { %1496 = dma.vmem_to_hbm [thread:$0]  %s1491_s8, 512, %s2578_s9, [#allocation4], %s2171_s18, %s2171_s18, %s2172_s19  }
 0x5c7   :  { %2160 = dma.done.wait [#allocation4], 512  }
 0x5c8   :  { %2161 = vsyncadd [#allocation4], 4294966784 }
 0x5c9   :  { %1500 = vsyncpa [#allocation3], 1 }
 0x5ca   :  { %1501 = vsyncpa [#allocation6], 1 }
 0x5cb   :  { %1502 = vsyncpa [#allocation4], 1 }

</bundles_post_ra>
